<compile_context>
chip_gen: v7x
topology: tpu7x:2x2x1
jax: 0.10.0
libtpu: 0.0.40
codegen_flags: <defaults>
</compile_context>

<pallas_src>
import functools

import jax
import jax.numpy as jnp
from jax.experimental import pallas as pl
from jax.experimental.pallas import tpu as pltpu


_SUBLANE_BY_ITEMSIZE = {4: 8, 2: 16, 1: 32}


def _sublane_multiple(dtype):
    return _SUBLANE_BY_ITEMSIZE.get(jnp.dtype(dtype).itemsize, 8)


@functools.lru_cache(maxsize=None)
def _target_block_bytes():
    """Per-generation pipeline-buffer size (keeps buffers inside scoped VMEM)."""
    try:
        kind = jax.devices()[0].device_kind.lower()
    except Exception:
        kind = ""
    if "v7" in kind:
        return 8 << 20      # v7x: ~3.2 TB/s HBM -> amortize per-step overhead
    if "v6" in kind:
        return 4 << 20
    return 2 << 20          # v5e (16 MiB scoped-VMEM default) and unknown


def _lane_width(n):
    """Largest lane-dense width (multiple of 128) that divides n exactly."""
    for lanes in (512, 256, 128):
        if n % lanes == 0:
            return lanes
    return None


def _plan_tile_rows(rows, lanes, dtype):
    sub = _sublane_multiple(dtype)
    if rows <= sub:
        return rows                              # single full-array block
    itemsize = jnp.dtype(dtype).itemsize
    block_bytes = _target_block_bytes()
    max_rows = max(sub, (block_bytes // (lanes * itemsize)) // sub * sub)
    # >= 2 grid steps whenever possible (v7x megacore sharding of "parallel").
    half = -(-((rows + 1) // 2) // sub) * sub
    tile = min(max_rows, half)
    return max(sub, (tile // sub) * sub)


# ---------------------------------------------------------------------------
# Backward Pallas kernel: o = g * (-alpha), alpha read from SMEM.
# ---------------------------------------------------------------------------

def _revgrad_bwd_kernel(neg_alpha_ref, g_ref, o_ref):
    scale = neg_alpha_ref[0, 0].astype(o_ref.dtype)   # keep bf16 math packed
    o_ref[...] = g_ref[...] * scale


def _revgrad_bwd(g, alpha):
    orig_shape, dtype = g.shape, g.dtype
    n = g.size
    lanes = None if n == 0 else _lane_width(n)
    if lanes is None:
        # TODO(synk): ragged sizes (not a multiple of 128) use a fused XLA
        # multiply — cheaper than padding a whole extra HBM copy just to run
        # a standalone Pallas kernel.
        return (g * (-alpha)).astype(dtype)

    rows = n // lanes
    tile_rows = _plan_tile_rows(rows, lanes, dtype)
    itemsize = jnp.dtype(dtype).itemsize
    block_bytes = tile_rows * lanes * itemsize

    g2d = g.reshape(rows, lanes)                 # contiguous reshape: no copy
    neg_alpha = jnp.asarray(-alpha, dtype=jnp.float32).reshape(1, 1)

    out2d = pl.pallas_call(
        _revgrad_bwd_kernel,
        out_shape=jax.ShapeDtypeStruct((rows, lanes), dtype),
        grid=(pl.cdiv(rows, tile_rows),),
        in_specs=[
            pl.BlockSpec(memory_space=pltpu.MemorySpace.SMEM),    # -alpha
            pl.BlockSpec((tile_rows, lanes), lambda i: (i, 0)),   # cotangent
        ],
        out_specs=pl.BlockSpec((tile_rows, lanes), lambda i: (i, 0)),
        input_output_aliases={1: 0},    # output reuses the cotangent buffer
        compiler_params=pltpu.CompilerParams(
            dimension_semantics=("parallel",),
            vmem_limit_bytes=4 * block_bytes + (4 << 20)),
        cost_estimate=pl.CostEstimate(
            flops=n, transcendentals=0, bytes_accessed=2 * n * itemsize),
    )(neg_alpha, g2d)

    return out2d.reshape(orig_shape)


# ---------------------------------------------------------------------------
# custom_vjp: identity forward (no kernel), Pallas-scaled reversal backward.
# ---------------------------------------------------------------------------

@jax.custom_vjp
def gradient_reversal(x, alpha):
    del alpha
    return x                      # forward is a pure identity


def _gr_fwd(x, alpha):
    return x, alpha


def _gr_bwd(alpha, g):
    dx = _revgrad_bwd(g, alpha)
    return dx, jnp.zeros_like(alpha)   # no gradient w.r.t. alpha (matches torch)


gradient_reversal.defvjp(_gr_fwd, _gr_bwd)


class GradientReversal:
    """JAX/Pallas equivalent of the PyTorch GradientReversal module."""

    def __init__(self, alpha):
        self.alpha = jnp.asarray(alpha, dtype=jnp.float32)

    def __call__(self, x):
        return gradient_reversal(x, self.alpha)


# ---------------------------------------------------------------------------
# Main
# ---------------------------------------------------------------------------

if __name__ == "__main__":
    key = jax.random.PRNGKey(0)
    # NCHW input, consistent with conv feature maps feeding revgrad.
    x = jax.random.normal(key, (2, 4, 16, 16), dtype=jnp.float32)

    alpha = 0.5
    module = GradientReversal(alpha)

    # Forward: exact identity.
    y = jax.block_until_ready(module(x))
    assert y.shape == x.shape and y.dtype == x.dtype
    assert bool(jnp.allclose(y, x)), "forward is not identity"

    # Backward: gradient must be -alpha * upstream_grad.
    dx = jax.block_until_ready(jax.grad(lambda inp: jnp.sum(module(inp)))(x))
    assert bool(jnp.allclose(dx, -alpha * jnp.ones_like(x))), "backward wrong"

    # Changing alpha reuses the same compiled kernel (alpha flows via SMEM).
    module2 = GradientReversal(1.25)
    dx2 = jax.block_until_ready(
        jax.grad(lambda inp: jnp.sum(module2(inp)))(x))
    assert bool(jnp.allclose(dx2, -1.25 * jnp.ones_like(x))), "alpha scaling wrong"

    # Larger case to exercise the multi-step (>= 2 tiles) grid path.
    x_big = jax.random.normal(key, (4, 16, 32, 32), dtype=jnp.float32)
    dx_big = jax.block_until_ready(
        jax.grad(lambda inp: jnp.sum(module(inp)))(x_big))
    assert bool(jnp.allclose(dx_big, -alpha * jnp.ones_like(x_big))), "tiled path wrong"

    # Ragged size (not a multiple of 128) takes the fused-XLA fallback path.
    x_odd = jax.random.normal(key, (3, 5, 7), dtype=jnp.float32)
    dx_odd = jax.block_until_ready(
        jax.grad(lambda inp: jnp.sum(module(inp)))(x_odd))
    assert bool(jnp.allclose(dx_odd, -alpha * jnp.ones_like(x_odd))), "fallback wrong"

    print("KERNEL_OK")
</pallas_src>

<mosaic_0001>
module attributes {stable_mosaic.version = 11 : i64} {
  func.func @_revgrad_bwd_kernel(%arg0: i32, %arg1: memref<1x1xf32, #tpu.memory_space<smem>>, %arg2: memref<4x512xf32, #tpu.memory_space<vmem>>, %arg3: memref<4x512xf32, #tpu.memory_space<vmem>>) attributes {dimension_semantics = [#tpu.dimension_semantics<parallel>], iteration_bounds = array<i64: 1>, scalar_prefetch = 0 : i64, scratch_operands = 0 : i64, tpu.core_type = #tpu.core_type<tc>, window_params = [{transform_indices = @transform_0, window_bounds = array<i64: 1, 1>}, {transform_indices = @transform_1, window_bounds = array<i64: 4, 512>}, {transform_indices = @transform_2, window_bounds = array<i64: 4, 512>}]} {
    %c0 = arith.constant 0 : index
    %c0_0 = arith.constant 0 : index
    %0 = memref.load %arg1[%c0, %c0_0] : memref<1x1xf32, #tpu.memory_space<smem>>
    %c0_1 = arith.constant 0 : index
    %c0_2 = arith.constant 0 : index
    %1 = vector.load %arg2[%c0_1, %c0_2] : memref<4x512xf32, #tpu.memory_space<vmem>>, vector<4x512xf32>
    %2 = vector.broadcast %0 : f32 to vector<4x512xf32>
    %3 = arith.mulf %1, %2 : vector<4x512xf32>
    %c0_3 = arith.constant 0 : index
    %c0_4 = arith.constant 0 : index
    %4 = vector.load %arg3[%c0_3, %c0_4] : memref<4x512xf32, #tpu.memory_space<vmem>>, vector<4x512xf32>
    tpu.vector_store %arg3[%c0_3, %c0_4], %3 {strides = array<i32>} : memref<4x512xf32, #tpu.memory_space<vmem>>, vector<4x512xf32>,
    return
  }
  func.func @transform_0(%arg0: i32) -> (i32, i32) {
    %c0_i32 = arith.constant 0 : i32
    %c0_i32_0 = arith.constant 0 : i32
    %c0_i32_1 = arith.constant 0 : i32
    return %c0_i32, %c0_i32_0 : i32, i32
  }
  func.func @transform_1(%arg0: i32) -> (i32, i32) {
    %c0_i32 = arith.constant 0 : i32
    %c0_i32_0 = arith.constant 0 : i32
    return %arg0, %c0_i32 : i32, i32
  }
  func.func @transform_2(%arg0: i32) -> (i32, i32) {
    %c0_i32 = arith.constant 0 : i32
    %c0_i32_0 = arith.constant 0 : i32
    return %arg0, %c0_i32 : i32, i32
  }
}

</mosaic_0001>

<bundles_post_ra>
// kernel: tpu_custom_call.1
= control target key start
LH: loop header
LB: loop body
LE: loop exit
PB: predicated region body
PF: predicated region fallthrough
CT: control target
= control target key end

     0   :  { %8 = vsyncpa [#allocation4], 0  ;;  %s142_s0 = inlined_call_operand.<no memory space> [shape: f32[1,1], index: 0, kind: input, shape index: {}]   ;;  %s143_s1 = inlined_call_operand.hbm [shape: f32[4,512], index: 1, kind: input, shape index: {}, may-alias: {1,2}]   ;;  %s144_s2 = inlined_call_operand.hbm [shape: f32[4,512], index: 2, kind: output, shape index: {}, may-alias: {1,2}]  }
   0x1   :  { %9 = vsyncpa [#allocation5], 0  ;;  %s98_s9 = smov [#allocation3]   ;;  %s50_s13 = scalar_lea.hbm %s143_s1, 256 }
   0x2   :  { %s18_s10 = sshll.u32 %s98_s9, 4  ;;  %p51_p0 = scmp.ne.s32.totalorder %s143_s1, %s50_s13  ;;  %s19_s10 = int_to_ptr.vmem [resolvable:$true] %s18_s10 }
   0x3   :  { %p54_p1 = scmp.lt.u32.totalorder %s50_s13, %s143_s1 }
   0x5   :  { %p56_p2 = pnand %p54_p1, %p51_p0 }
   0x7   :  { %59 = shalt.err (!%p56_p2)
}
   0x8   :  { %s60_s18 = scalar_lea.vmem %s19_s10, 256  ;;  %p65_p4 = scmp.lt.s32.totalorder %s19_s10, %s19_s10 }
   0x9   :  { %p61_p3 = scmp.ne.s32.totalorder %s19_s10, %s60_s18  ;;  %p66_p5 = scmp.lt.s32.totalorder %s60_s18, %s60_s18 }
   0xb   :  { %p67_p6 = por %p66_p5, %p65_p4 }
   0xd   :  { %p68_p7 = pnand %p67_p6, %p61_p3 }
   0xf   :  { %71 = shalt.err (!%p68_p7)
}
  0x10   :  { %21 = dma.hbm_to_vmem [thread:$0]  %s143_s1, 256, %s19_s10, [#allocation4]  }
  0x11   :  { %94 = dma.done.wait [#allocation4], 256  }
  0x12   :  { %95 = vsyncadd [#allocation4], 4294967040  ;;  %v28_v0 = vstv %s142_s0  ;;  %s99_s23 = smov [#allocation6]   ;;  %v26_v1 = vld [vmem:[#allocation3] sm:$0xff]  ;;  %v27_v2 = vld [vmem:[#allocation3 + $0x8] sm:$0xff] }
  0x13   :  { %s39_s24 = sshll.u32 %s99_s23, 4  ;;  %v29_v3 = vmul.f32 %v28_v0, %v26_v1  ;;  %v30_v4 = vmul.f32 %v28_v0, %v27_v2  ;;  %s40_s24 = int_to_ptr.vmem [resolvable:$true] %s39_s24 }
  0x14   :  { %s72_s25 = scalar_lea.vmem %s40_s24, 256  ;;  %p77_p9 = scmp.lt.s32.totalorder %s40_s24, %s40_s24 }
  0x15   :  { %31 = vst [vmem:[#allocation6] sm:$0xff] %v29_v3  ;;  %32 = vst [vmem:[#allocation6 + $0x8] sm:$0xff] %v30_v4  ;;  %p73_p8 = scmp.ne.s32.totalorder %s40_s24, %s72_s25  ;;  %p78_p10 = scmp.lt.s32.totalorder %s72_s25, %s72_s25 }
  0x17   :  { %p79_p11 = por %p78_p10, %p77_p9 }
  0x19   :  { %p80_p12 = pnand %p79_p11, %p73_p8 }
  0x1b   :  { %83 = shalt.err (!%p80_p12)
}
  0x1c   :  { %s84_s0 = scalar_lea.hbm %s144_s2, 256 }
  0x1d   :  { %p85_p13 = scmp.ne.s32.totalorder %s144_s2, %s84_s0  ;;  %p88_p0 = scmp.lt.u32.totalorder %s84_s0, %s144_s2 }
  0x1f   :  { %p90_p1 = pnand %p88_p0, %p85_p13 }
  0x21   :  { %93 = shalt.err (!%p90_p1)
}
  0x22   :  { %42 = dma.vmem_to_hbm [thread:$0]  %s40_s24, 256, %s144_s2, [#allocation5]  }
  0x23   :  { %96 = dma.done.wait [#allocation5], 256  }
  0x24   :  { %97 = vsyncadd [#allocation5], 4294967040 }
  0x25   :  { %46 = vsyncpa [#allocation4], 1 }
  0x26   :  { %47 = vsyncpa [#allocation5], 1 }

</bundles_post_ra>
